<compile_context>
chip_gen: v7x
topology: tpu7x:2x2x1
jax: 0.10.0
libtpu: 0.0.40
codegen_flags: <defaults>
</compile_context>

<pallas_src>
import math

import jax
import jax.numpy as jnp
from jax.experimental import pallas as pl
from jax.experimental.pallas import tpu as pltpu


# --------------------------------------------------------------------------
# Pallas kernel: GEMM + bias on one lane-dense M tile.
#   p_ref : [Kp, tm]  im2col patches (transposed), K zero-padded to Kp
#   w_ref : [C,  Kp]  conv weight in GEMM layout (built once at init)
#   b_ref : [C,  1 ]  bias column (broadcast over lanes)
#   out   : [C,  tm]  lane-dense output tile
# --------------------------------------------------------------------------
def _conv_gemm_kernel(p_ref, w_ref, b_ref, out_ref):
    acc = jnp.dot(w_ref[...], p_ref[...], preferred_element_type=jnp.float32)  # MXU
    out_ref[...] = (acc + b_ref[...]).astype(out_ref.dtype)


def _pick_tile_m(M):
    # Lane-dense tiles: multiples of 128 lanes, capped at 512 to keep the
    # double-buffered working set tiny vs. v7x's 64 MiB VMEM.
    for tm in (512, 384, 256, 128):
        if M % tm == 0:
            return tm
    return M  # irregular / tiny M: single full-extent block


def _conv_gemm_pallas(patches_t, w_gemm, b_col):
    Kp, M = patches_t.shape
    C = w_gemm.shape[0]
    tm = _pick_tile_m(M)
    grid = (M // tm,)

    cost = pl.CostEstimate(
        flops=2 * C * Kp * M,
        transcendentals=0,
        bytes_accessed=4 * (Kp * M + C * Kp + C + C * M),
    )
    return pl.pallas_call(
        _conv_gemm_kernel,
        out_shape=jax.ShapeDtypeStruct((C, M), jnp.float32),
        grid=grid,
        in_specs=[
            pl.BlockSpec((Kp, tm), lambda i: (0, i)),   # patches^T tile (lanes = M)
            pl.BlockSpec((C, Kp), lambda i: (0, 0)),    # weight, resident across grid
            pl.BlockSpec((C, 1), lambda i: (0, 0)),     # bias column
        ],
        out_specs=pl.BlockSpec((C, tm), lambda i: (0, i)),
        compiler_params=pltpu.CompilerParams(
            dimension_semantics=("parallel",),          # shard M tiles across TCs (v7x)
            allow_input_fusion=[True, False, False],    # fuse im2col producer into input 0
            vmem_limit_bytes=32 * 1024 * 1024,
        ),
        cost_estimate=cost,
    )(patches_t, w_gemm, b_col)


# --------------------------------------------------------------------------
# Forward glue: pad + strided im2col (indexing only, fused into the call) +
# Pallas GEMM + NCHW epilogue.
# --------------------------------------------------------------------------
@jax.jit
def downsample_forward(x, w_gemm, b_col):
    """x: [B, C, H, W] f32; w_gemm: [C, Kp]; b_col: [C, 1] -> [B, C, Ho, Wo] f32."""
    B, C, H, W = x.shape
    Ho = (H + 2 - 3) // 2 + 1
    Wo = (W + 2 - 3) // 2 + 1
    K = C * 9
    Kp = w_gemm.shape[1]

    x_pad = jnp.pad(x, ((0, 0), (0, 0), (1, 1), (1, 1)))          # padding=1

    # im2col with stride 2: 9 static strided slices, each [B, C, Ho, Wo].  With
    # allow_input_fusion this producer fuses into the pallas_call input instead of
    # round-tripping a materialized [Kp, M] array through HBM.
    slabs = [
        x_pad[:, :, ky:ky + 2 * Ho:2, kx:kx + 2 * Wo:2]
        for ky in range(3)
        for kx in range(3)
    ]
    pt = jnp.stack(slabs, axis=0)                                  # [9, B, C, Ho, Wo]
    # -> [C, 9, B, Ho, Wo] -> [K, M]; K ordered (c_in, ky, kx) to match PyTorch's
    # weight.reshape(C_out, C_in*3*3); M ordered (b, oy, ox).
    pt = pt.transpose(2, 0, 1, 3, 4).reshape(K, B * Ho * Wo)
    pt = jnp.pad(pt, ((0, Kp - K), (0, 0)))                        # zero-pad K -> Kp
    # For production shapes: cast pt (and w_gemm at init) to bf16 here; keep the
    # f32 accumulate in the kernel and relax the test tolerance to ~1e-2.

    out_t = _conv_gemm_pallas(pt, w_gemm, b_col)                   # [C, M] lane-dense
    # NCHW epilogue to match the nn.Module contract; consumers that accept the
    # [C, B*Ho*Wo] layout should take out_t directly and skip this HBM round trip.
    return out_t.reshape(C, B, Ho, Wo).transpose(1, 0, 2, 3)       # [B, C, Ho, Wo]


# --------------------------------------------------------------------------
# Parameter init (PyTorch Conv2d-like uniform init) — GEMM layouts built ONCE,
# contraction dim zero-padded to a sublane multiple at init.
# --------------------------------------------------------------------------
def init_params(key, channels):
    k_w, k_b = jax.random.split(key)
    fan_in = channels * 3 * 3
    bound = 1.0 / math.sqrt(fan_in)
    w = jax.random.uniform(k_w, (channels, channels, 3, 3), jnp.float32, -bound, bound)
    b = jax.random.uniform(k_b, (channels,), jnp.float32, -bound, bound)
    K = channels * 9
    Kp = ((K + 7) // 8) * 8                                   # 36 -> 40
    w_gemm = jnp.pad(w.reshape(channels, K), ((0, 0), (0, Kp - K)))  # [C_out, Kp]
    b_col = b.reshape(channels, 1)                            # [C_out, 1]
    return w, b, w_gemm, b_col


def reference_forward(x, w, b):
    out = jax.lax.conv_general_dilated(
        x, w, window_strides=(2, 2), padding=((1, 1), (1, 1)),
        dimension_numbers=("NCHW", "OIHW", "NCHW"))
    return out + b[None, :, None, None]


if __name__ == "__main__":
    batch, channels, spatial = 2, 4, 16

    key = jax.random.PRNGKey(0)
    k_params, k_x = jax.random.split(key)

    w, b, w_gemm, b_col = init_params(k_params, channels)
    x = jax.random.normal(k_x, (batch, channels, spatial, spatial), jnp.float32)

    out = downsample_forward(x, w_gemm, b_col)
    out = jax.block_until_ready(out)

    ref = reference_forward(x, w, b)
    assert out.shape == (batch, channels, spatial // 2, spatial // 2), out.shape
    assert out.dtype == jnp.float32
    assert jnp.allclose(out, ref, atol=1e-4, rtol=1e-4)

    print("KERNEL_OK")
</pallas_src>

<mosaic_0001>
module attributes {stable_mosaic.version = 11 : i64} {
  func.func @_conv_gemm_kernel(%arg0: i32, %arg1: memref<40x128xf32, #tpu.memory_space<vmem>>, %arg2: memref<4x40xf32, #tpu.memory_space<vmem>>, %arg3: memref<4x1xf32, #tpu.memory_space<vmem>>, %arg4: memref<4x128xf32, #tpu.memory_space<vmem>>) attributes {dimension_semantics = [#tpu.dimension_semantics<parallel>], iteration_bounds = array<i64: 1>, scalar_prefetch = 0 : i64, scratch_operands = 0 : i64, tpu.core_type = #tpu.core_type<tc>, window_params = [{transform_indices = @transform_0, window_bounds = array<i64: 40, 128>}, {pipeline_mode = #tpu.pipeline_mode<synchronous>, transform_indices = @transform_1, window_bounds = array<i64: 4, 40>}, {pipeline_mode = #tpu.pipeline_mode<synchronous>, transform_indices = @transform_2, window_bounds = array<i64: 4, 1>}, {transform_indices = @transform_3, window_bounds = array<i64: 4, 128>}]} {
    %c0 = arith.constant 0 : index
    %c0_0 = arith.constant 0 : index
    %0 = vector.load %arg2[%c0, %c0_0] : memref<4x40xf32, #tpu.memory_space<vmem>>, vector<4x40xf32>
    %c0_1 = arith.constant 0 : index
    %c0_2 = arith.constant 0 : index
    %1 = vector.load %arg1[%c0_1, %c0_2] : memref<40x128xf32, #tpu.memory_space<vmem>>, vector<40x128xf32>
    %cst = arith.constant dense<0.000000e+00> : vector<4x128xf32>
    %2 = tpu.matmul %0, %1, %cst {dimension_numbers = #tpu.dot_dimension_numbers<[1], [0], [0], [1], [0, 0, 1, 1], [], []>} : vector<4x40xf32>, vector<40x128xf32>, vector<4x128xf32> -> vector<4x128xf32>
    %c0_3 = arith.constant 0 : index
    %c0_4 = arith.constant 0 : index
    %3 = vector.load %arg3[%c0_3, %c0_4] : memref<4x1xf32, #tpu.memory_space<vmem>>, vector<4x1xf32>
    %4 = vector.broadcast %3 : vector<4x1xf32> to vector<4x128xf32>
    %5 = arith.addf %2, %4 : vector<4x128xf32>
    %c0_5 = arith.constant 0 : index
    %c0_6 = arith.constant 0 : index
    %6 = vector.load %arg4[%c0_5, %c0_6] : memref<4x128xf32, #tpu.memory_space<vmem>>, vector<4x128xf32>
    tpu.vector_store %arg4[%c0_5, %c0_6], %5 {strides = array<i32>} : memref<4x128xf32, #tpu.memory_space<vmem>>, vector<4x128xf32>,
    return
  }
  func.func @transform_0(%arg0: i32) -> (i32, i32) {
    %c0_i32 = arith.constant 0 : i32
    %c0_i32_0 = arith.constant 0 : i32
    return %c0_i32, %arg0 : i32, i32
  }
  func.func @transform_1(%arg0: i32) -> (i32, i32) {
    %c0_i32 = arith.constant 0 : i32
    %c0_i32_0 = arith.constant 0 : i32
    %c0_i32_1 = arith.constant 0 : i32
    return %c0_i32, %c0_i32_0 : i32, i32
  }
  func.func @transform_2(%arg0: i32) -> (i32, i32) {
    %c0_i32 = arith.constant 0 : i32
    %c0_i32_0 = arith.constant 0 : i32
    %c0_i32_1 = arith.constant 0 : i32
    return %c0_i32, %c0_i32_0 : i32, i32
  }
  func.func @transform_3(%arg0: i32) -> (i32, i32) {
    %c0_i32 = arith.constant 0 : i32
    %c0_i32_0 = arith.constant 0 : i32
    return %c0_i32, %arg0 : i32, i32
  }
}

</mosaic_0001>

<bundles_post_ra>
// kernel: downsample_forward.2
= control target key start
LH: loop header
LB: loop body
LE: loop exit
PB: predicated region body
PF: predicated region fallthrough
CT: control target
= control target key end

     0   :  { %v56_v4 = vlaneseq  ;;  %v190_v5 = vmov 0.0|0.0   ;;  %vm191_vm0 = vmmov 0   ;;  %v192_v8 = vmov 0.0   ;;  %s246_s0 = inlined_call_operand.vmem [shape: f32[4,40], index: 0, kind: input, shape index: {}]   ;;  %s247_s1 = inlined_call_operand.vmem [shape: f32[4,1], index: 1, kind: input, shape index: {}]   ;;  %s248_s2 = inlined_call_operand.vmem [shape: f32[36,128], index: 2, kind: input, shape index: {}]   ;;  %s249_s3 = inlined_call_operand.<no memory space> [shape: f32[], index: 3, kind: input, shape index: {}]   ;;  %s250_s4 = inlined_call_operand.vmem [shape: f32[4,128], index: 4, kind: output, shape index: {}]  }
   0x1   :  { %v9_v0 = vstv %s249_s3  ;;  %v16_v1 = vld [vmem:[%s248_s2] sm:$0xff]  ;;  %v155_v2 = vld [vmem:[%s248_s2 + $0x8] sm:$0xff]  ;;  %v156_v3 = vld [vmem:[%s248_s2 + $0x10] sm:$0xff]  ;;  %179 = vmatprep.subr.bf16.mxu0 %v190_v5  ;;  %176 = vmatprep.mubr.msk.f32.mxu0 %vm191_vm0, %v192_v8  ;;  %v193_v10 = vmov 0   ;;  %vm76_vm2 = vcmask 326656  }
   0x2   :  { %v180_v6 = vpack.c.bf16 %v155_v2, %v16_v1  ;;  %v157_v7 = vld [vmem:[%s248_s2 + $0x18] sm:$0xff]  ;;  %v57_v9 = vshrl.u32 %v56_v4, 7  ;;  %189 = vset.pattern.permute.xlu0 %v193_v10  ;;  %v70_v11 = vld [vmem:[%s247_s1] sm:$0xf] }
   0x3   :  { %v183_v12 = vpack.c.bf16 %v157_v7, %v156_v3  ;;  %73 = vperm.xlu0 %189, %v70_v11   ;;  %v158_v14 = vld [vmem:[%s248_s2 + $0x20] sm:$0xff] }
   0x4   :  { %181 = vmatpush3.bf16.msra.mxu0 %v180_v6  ;;  %v58_v13 = vadd.s32 32, %v57_v9  ;;  %v64_v16 = vld [vmem:[%s246_s0] sm:$0xf] }
   0x5   :  { %182 = vmatprep.subr.bf16.mxu0 %v190_v5 }
   0x6   :  { %vm59_vm1 = vcmp.lt.s32.totalorder %v58_v13, 36 }
   0x7   :  { %v60_v15 = vsel %vm59_vm1, %v158_v14, %v9_v0 }
   0x8   :  { %184 = vmatpush3.bf16.msra.mxu0 %v183_v12 }
   0x9   :  { %174 = vmatprep.subr.mxu0 %v192_v8 }
   0xc   :  { %175 = vmatpush3.msra.mxu0 %v60_v15 }
   0xd   :  { %177 = vmatmul.mubr.msk.f32.vlgmr.msra.gmra.mrb[0].mxu0 %vm76_vm2, %v64_v16 }
  0x82   :  { %v74_v17 = vpop.permute.xlu0 %73 }
  0xe0   :  { %v146_v18 = vpop.f32.mrb[0].mxu0 }
  0xe1   :  { %v147_v19 = vadd.f32 %v146_v18, %v74_v17  ;;  %v178_v20 = vpop.f32.mrb[1].mxu0 }
  0xe3   :  { %150 = vst [vmem:[%s250_s4] sm:$0xf] %v147_v19 }

</bundles_post_ra>
